<compile_context>
chip_gen: v6e
topology: v6e:2x2x1
jax: 0.10.0
libtpu: 0.0.40
codegen_flags: <defaults>
</compile_context>

<pallas_src>
import jax
import jax.numpy as jnp
from jax import lax
from jax.experimental import pallas as pl
from jax.experimental.pallas import tpu as pltpu


OUT_LANES = 128  # lane-dense output slab; lane 0 = q1, lane 1 = q2, rest padding


def _round_up(v, m):
    return (v + m - 1) // m * m


# ----------------------------------------------------------------------------
# Kernels
# ----------------------------------------------------------------------------
def _sac_twin_q_kernel_fused(xa_ref, w1_ref, b1_ref, w2_ref, b2_ref,
                             w3_ref, b3_ref, out_ref):
    """v6e/v7x path: 256-wide block-diagonal layer-2, lane-dense MXU layer-3."""
    # Layer 1: both heads fused along N -> (TB, 2H), single K=(obs+act) dot.
    h1 = jnp.dot(xa_ref[...], w1_ref[...], preferred_element_type=jnp.float32)
    h1 = jnp.maximum(h1 + b1_ref[...], 0.0).astype(w2_ref.dtype)          # ReLU

    # Layer 2: block-diagonal (2H, 2H) weight -> one full 256-wide MXU pass.
    h2 = jnp.dot(h1, w2_ref[...], preferred_element_type=jnp.float32)
    h2 = jnp.maximum(h2 + b2_ref[...], 0.0).astype(w3_ref.dtype)          # ReLU

    # Layer 3: lane-dense (2H, 128) head; lane 0 = q1, lane 1 = q2.
    q = jnp.dot(h2, w3_ref[...], preferred_element_type=jnp.float32)
    out_ref[...] = (q + b3_ref[...]).astype(out_ref.dtype)


def _sac_twin_q_kernel_split(xa_ref, w1_ref, b1_ref, w2s_ref, b2_ref,
                             w3r_ref, b3_ref, out_ref):
    """v5e path: two independent 128-wide layer-2 dots; layer-3 on VPU+XLU."""
    H = w2s_ref.shape[1]

    # Layer 1 (same fused single dot as the other variant).
    h1 = jnp.dot(xa_ref[...], w1_ref[...], preferred_element_type=jnp.float32)
    h1 = jnp.maximum(h1 + b1_ref[...], 0.0).astype(w2s_ref.dtype)

    # Layer 2: two (TB,H)@(H,H) dots -> no all-zero off-diagonal MXU passes on 128^2 MXU.
    b2 = b2_ref[...]
    h2a = jnp.dot(h1[:, :H], w2s_ref[0], preferred_element_type=jnp.float32)
    h2b = jnp.dot(h1[:, H:], w2s_ref[1], preferred_element_type=jnp.float32)
    h2a = jnp.maximum(h2a + b2[:, :H], 0.0)
    h2b = jnp.maximum(h2b + b2[:, H:], 0.0)

    # Layer 3: VPU multiply + XLU lane reduction (MXU stays out of a 2-column head).
    w3r = w3r_ref[...]
    q1 = jnp.sum(h2a * w3r[0:1, :], axis=-1, keepdims=True)   # (TB, 1)
    q2 = jnp.sum(h2b * w3r[1:2, :], axis=-1, keepdims=True)   # (TB, 1)

    lane = lax.broadcasted_iota(jnp.int32, out_ref.shape, 1)
    q = jnp.where(lane == 0, q1, jnp.where(lane == 1, q2, 0.0))
    out_ref[...] = (q + b3_ref[...]).astype(out_ref.dtype)


# ----------------------------------------------------------------------------
# One-time parameter fusion (host side)
# ----------------------------------------------------------------------------
def fuse_q_params(raw_params, compute_dtype=jnp.bfloat16):
    """Fuse the two per-net parameter sets into MXU-friendly tensors (one-time).

    Weights are expected as (in_features, out_features), biases as (1, out).
    Real torch state_dicts ((out,in) weights, (out,) biases) need a transpose /
    reshape before calling this.
    """
    (w1a, b1a, w2a, b2a, w3a, b3a,
     w1b, b1b, w2b, b2b, w3b, b3b) = raw_params
    H = w1a.shape[1]

    # Layer 1: single (K, 2H) weight over the concatenated [obs, act] input.
    w1 = jnp.concatenate([w1a, w1b], axis=1).astype(compute_dtype)
    b1 = jnp.concatenate([b1a, b1b], axis=1).astype(jnp.float32)

    # Layer 2, fused form (v6e/v7x): block-diagonal (2H, 2H).
    w2 = jnp.zeros((2 * H, 2 * H), compute_dtype)
    w2 = w2.at[:H, :H].set(w2a.astype(compute_dtype))
    w2 = w2.at[H:, H:].set(w2b.astype(compute_dtype))
    b2 = jnp.concatenate([b2a, b2b], axis=1).astype(jnp.float32)

    # Layer 2, split form (v5e): two stacked (H, H) blocks.
    w2_stack = jnp.stack([w2a, w2b], axis=0).astype(compute_dtype)   # (2, H, H)

    # Layer 3, fused form: lane-dense (2H, 128) head (lane 0 = q1, lane 1 = q2).
    w3 = jnp.zeros((2 * H, OUT_LANES), compute_dtype)
    w3 = w3.at[:H, 0].set(w3a[:, 0].astype(compute_dtype))
    w3 = w3.at[H:, 1].set(w3b[:, 0].astype(compute_dtype))

    # Layer 3, split form: head rows for VPU/XLU reduction.
    w3_rows = jnp.stack([w3a[:, 0], w3b[:, 0]], axis=0).astype(jnp.float32)  # (2, H)

    b3 = jnp.zeros((1, OUT_LANES), jnp.float32)
    b3 = b3.at[0, 0].set(b3a[0, 0])
    b3 = b3.at[0, 1].set(b3b[0, 0])

    return dict(w1=w1, b1=b1, w2=w2, b2=b2, w3=w3, b3=b3,
                w2_stack=w2_stack, w3_rows=w3_rows, H=H)


# ----------------------------------------------------------------------------
# Wrapper
# ----------------------------------------------------------------------------
def _pick_batch_tile(b_pad8, device_kind):
    """Choose (tile_b, n_steps): big tiles (few grid steps), >=2 steps on 2-TC chips."""
    dk = device_kind.lower()
    is_v5e = ("v5e" in dk) or ("v5 lite" in dk) or ("v5lite" in dk)
    two_tc = ("v7" in dk) or ("7x" in dk)
    tile_cap = 512 if is_v5e else 2048           # per-grid-step overhead ~0.35us
    n_steps = max(1, pl.cdiv(b_pad8, tile_cap))
    if two_tc and n_steps == 1 and b_pad8 >= 512:
        n_steps = 2                              # shard batch across both TensorCores
    tb = _round_up(pl.cdiv(b_pad8, n_steps), 8)
    return tb, n_steps, is_v5e


def sac_q_vals(x, h, a, fused_params, *, compute_dtype=jnp.bfloat16, variant=None):
    """q_vals(x, h, a) semantics: returns (min_q, q1, q2, h); q shapes (B, 1) f32."""
    p = fused_params
    B = x.shape[0]
    x_flat = x.reshape(B, -1)                    # _extract_features, normalize_obs=False
    xa = jnp.concatenate([x_flat, a], axis=1).astype(compute_dtype)  # torch.cat((x, a), 1)
    K = xa.shape[1]
    H2 = p["w2"].shape[0]                        # 2 * hidden
    H = H2 // 2

    device_kind = jax.devices()[0].device_kind
    if variant is None:
        dk = device_kind.lower()
        is_v5e = ("v5e" in dk) or ("v5 lite" in dk) or ("v5lite" in dk)
        variant = "split" if is_v5e else "fused"

    # Batch tiling: sublane dim must be a multiple of 8 (or full extent).
    b_pad8 = _round_up(max(B, 8), 8)
    tb, n_steps, _ = _pick_batch_tile(b_pad8, device_kind)
    b_pad = tb * n_steps
    if b_pad != B:
        xa = jnp.pad(xa, ((0, b_pad - B), (0, 0)))

    grid = (n_steps,)
    batch_map = lambda i: (i, 0)
    fixed2 = lambda i: (0, 0)                    # weights stay VMEM-resident
    fixed3 = lambda i: (0, 0, 0)

    if variant == "fused":
        kernel = _sac_twin_q_kernel_fused
        weights = (p["w1"], p["b1"], p["w2"], p["b2"], p["w3"], p["b3"])
        flops = 2 * b_pad * (K * H2 + H2 * H2 + H2 * OUT_LANES)
    else:
        kernel = _sac_twin_q_kernel_split
        weights = (p["w1"], p["b1"], p["w2_stack"], p["b2"], p["w3_rows"], p["b3"])
        flops = 2 * b_pad * (K * H2 + 2 * H * H + 2 * H)

    w_specs = [pl.BlockSpec(w.shape, fixed3 if w.ndim == 3 else fixed2) for w in weights]
    in_specs = [pl.BlockSpec((tb, K), batch_map)] + w_specs
    out_specs = pl.BlockSpec((tb, OUT_LANES), batch_map)
    # bf16 output slab halves the dominant HBM-write term; upcast in the wrapper.
    out_shape = jax.ShapeDtypeStruct((b_pad, OUT_LANES), jnp.bfloat16)

    operands = (xa,) + weights
    bytes_accessed = sum(int(op.size) * op.dtype.itemsize for op in operands)
    bytes_accessed += b_pad * OUT_LANES * 2

    out = pl.pallas_call(
        kernel,
        grid=grid,
        in_specs=in_specs,
        out_specs=out_specs,
        out_shape=out_shape,
        compiler_params=pltpu.CompilerParams(
            dimension_semantics=("parallel",)),
        cost_estimate=pl.CostEstimate(
            flops=int(flops), transcendentals=0, bytes_accessed=int(bytes_accessed)),
    )(*operands)

    out = out[:B].astype(jnp.float32)
    q1 = out[:, 0:1]
    q2 = out[:, 1:2]
    min_q = jnp.minimum(q1, q2)                  # torch.min(q1_val, q2_val)
    return min_q, q1, q2, h                      # h passed through, as in torch


# ----------------------------------------------------------------------------
# Synthetic params + pure-JAX reference
# ----------------------------------------------------------------------------
def make_params(key, in_dim, hidden):
    """Deterministic synthetic weights for the twin Q networks (nn.Linear-like)."""
    ks = jax.random.split(key, 12)

    def lin(kw, fan_in, fan_out):
        scale = 1.0 / jnp.sqrt(jnp.float32(fan_in))
        return jax.random.uniform(kw, (fan_in, fan_out), jnp.float32, -scale, scale)

    params = []
    for i in range(2):  # q1, q2
        o = i * 6
        params += [
            lin(ks[o + 0], in_dim, hidden),
            jax.random.uniform(ks[o + 1], (1, hidden), jnp.float32, -0.05, 0.05),
            lin(ks[o + 2], hidden, hidden),
            jax.random.uniform(ks[o + 3], (1, hidden), jnp.float32, -0.05, 0.05),
            lin(ks[o + 4], hidden, 1),
            jax.random.uniform(ks[o + 5], (1, 1), jnp.float32, -0.05, 0.05),
        ]
    return tuple(params)


def reference_q_vals(x, a, raw_params, compute_dtype=jnp.bfloat16):
    """Pure-JAX reference (same bf16 casts, f32 accumulation, unfused weights)."""
    B = x.shape[0]
    xa = jnp.concatenate([x.reshape(B, -1), a], axis=1).astype(compute_dtype)
    (w1a, b1a, w2a, b2a, w3a, b3a,
     w1b, b1b, w2b, b2b, w3b, b3b) = raw_params

    def mlp(w1, b1, w2, b2, w3, b3):
        h1 = jnp.dot(xa, w1.astype(compute_dtype),
                     preferred_element_type=jnp.float32) + b1
        h1 = jnp.maximum(h1, 0.0).astype(compute_dtype)
        h2 = jnp.dot(h1, w2.astype(compute_dtype),
                     preferred_element_type=jnp.float32) + b2
        h2 = jnp.maximum(h2, 0.0).astype(compute_dtype)
        return jnp.dot(h2, w3.astype(compute_dtype),
                       preferred_element_type=jnp.float32) + b3

    q1 = mlp(w1a, b1a, w2a, b2a, w3a, b3a)
    q2 = mlp(w1b, b1b, w2b, b2b, w3b, b3b)
    return jnp.minimum(q1, q2), q1, q2


if __name__ == "__main__":
    B = 64
    OBS_DIM = 32
    ACT_DIM = 8
    HIDDEN = 128
    IN_DIM = OBS_DIM + ACT_DIM

    key = jax.random.PRNGKey(0)
    k_obs, k_act, k_par = jax.random.split(key, 3)

    x = jax.random.normal(k_obs, (B, OBS_DIM), jnp.float32)   # observations
    a = jax.random.normal(k_act, (B, ACT_DIM), jnp.float32)   # actions
    h0 = jnp.zeros((B, 1), jnp.float32)                       # hidden state (pass-through)
    raw_params = make_params(k_par, IN_DIM, HIDDEN)
    fused_params = fuse_q_params(raw_params)                  # one-time host fusion

    # SAC temperature: alpha = exp(log_alpha), initial_alpha = 1.0 (scalar glue).
    log_alpha = jnp.log(jnp.ones((1,), jnp.float32) * 1.0)
    alpha = jnp.exp(log_alpha)

    # Auto-dispatched variant for this device, plus both explicit variants for checks.
    min_q, q1, q2, h_out = sac_q_vals(x, h0, a, fused_params)
    outs_fused = sac_q_vals(x, h0, a, fused_params, variant="fused")
    outs_split = sac_q_vals(x, h0, a, fused_params, variant="split")
    jax.block_until_ready((min_q, q1, q2, h_out, alpha, outs_fused, outs_split))

    # Correctness check against an unfused plain-JAX reference (same bf16 casts).
    ref_min, ref_q1, ref_q2 = reference_q_vals(x, a, raw_params)
    assert q1.shape == (B, 1) and q2.shape == (B, 1) and min_q.shape == (B, 1)
    assert h_out.shape == h0.shape
    for (m_, q1_, q2_, _) in ((min_q, q1, q2, None), outs_fused, outs_split):
        assert jnp.allclose(q1_, ref_q1, atol=3e-2, rtol=3e-2)
        assert jnp.allclose(q2_, ref_q2, atol=3e-2, rtol=3e-2)
        assert jnp.allclose(m_, ref_min, atol=3e-2, rtol=3e-2)

    # TODO(synk): forward() / the policy distribution (tanh-Normal rsample,
    # log_prob, entropy) is NotImplementedError in SoftActorCritic itself and
    # only defined by concrete subclasses, so it is not reproduced here; the
    # optional obs/value RunningMeanStd normalization (normalize_obs=False
    # path) is likewise not part of this kernel.

    print("KERNEL_OK")
</pallas_src>

<mosaic_0001>
module attributes {stable_mosaic.version = 11 : i64} {
  func.func @_sac_twin_q_kernel_fused(%arg0: i32, %arg1: memref<64x40xbf16, #tpu.memory_space<vmem>>, %arg2: memref<40x256xbf16, #tpu.memory_space<vmem>>, %arg3: memref<1x256xf32, #tpu.memory_space<vmem>>, %arg4: memref<256x256xbf16, #tpu.memory_space<vmem>>, %arg5: memref<1x256xf32, #tpu.memory_space<vmem>>, %arg6: memref<256x128xbf16, #tpu.memory_space<vmem>>, %arg7: memref<1x128xf32, #tpu.memory_space<vmem>>, %arg8: memref<64x128xbf16, #tpu.memory_space<vmem>>) attributes {dimension_semantics = [#tpu.dimension_semantics<parallel>], iteration_bounds = array<i64: 1>, scalar_prefetch = 0 : i64, scratch_operands = 0 : i64, tpu.core_type = #tpu.core_type<tc>, window_params = [{transform_indices = @transform_0, window_bounds = array<i64: 64, 40>}, {pipeline_mode = #tpu.pipeline_mode<synchronous>, transform_indices = @transform_1, window_bounds = array<i64: 40, 256>}, {pipeline_mode = #tpu.pipeline_mode<synchronous>, transform_indices = @transform_2, window_bounds = array<i64: 1, 256>}, {pipeline_mode = #tpu.pipeline_mode<synchronous>, transform_indices = @transform_3, window_bounds = array<i64: 256, 256>}, {pipeline_mode = #tpu.pipeline_mode<synchronous>, transform_indices = @transform_4, window_bounds = array<i64: 1, 256>}, {pipeline_mode = #tpu.pipeline_mode<synchronous>, transform_indices = @transform_5, window_bounds = array<i64: 256, 128>}, {pipeline_mode = #tpu.pipeline_mode<synchronous>, transform_indices = @transform_6, window_bounds = array<i64: 1, 128>}, {transform_indices = @transform_7, window_bounds = array<i64: 64, 128>}]} {
    %c0 = arith.constant 0 : index
    %c0_0 = arith.constant 0 : index
    %0 = vector.load %arg1[%c0, %c0_0] : memref<64x40xbf16, #tpu.memory_space<vmem>>, vector<64x40xbf16>
    %c0_1 = arith.constant 0 : index
    %c0_2 = arith.constant 0 : index
    %1 = vector.load %arg2[%c0_1, %c0_2] : memref<40x256xbf16, #tpu.memory_space<vmem>>, vector<40x256xbf16>
    %cst = arith.constant dense<0.000000e+00> : vector<64x256xf32>
    %2 = tpu.matmul %0, %1, %cst {dimension_numbers = #tpu.dot_dimension_numbers<[1], [0], [0], [1], [0, 0, 1, 1], [], []>} : vector<64x40xbf16>, vector<40x256xbf16>, vector<64x256xf32> -> vector<64x256xf32>
    %c0_3 = arith.constant 0 : index
    %c0_4 = arith.constant 0 : index
    %3 = vector.load %arg3[%c0_3, %c0_4] : memref<1x256xf32, #tpu.memory_space<vmem>>, vector<1x256xf32>
    %4 = vector.broadcast %3 : vector<1x256xf32> to vector<64x256xf32>
    %5 = arith.addf %2, %4 : vector<64x256xf32>
    %cst_5 = arith.constant 0.000000e+00 : f32
    %6 = vector.broadcast %cst_5 : f32 to vector<64x256xf32>
    %7 = arith.maximumf %5, %6 : vector<64x256xf32>
    %8 = arith.truncf %7 : vector<64x256xf32> to vector<64x256xbf16>
    %c0_6 = arith.constant 0 : index
    %c0_7 = arith.constant 0 : index
    %9 = vector.load %arg4[%c0_6, %c0_7] : memref<256x256xbf16, #tpu.memory_space<vmem>>, vector<256x256xbf16>
    %cst_8 = arith.constant dense<0.000000e+00> : vector<64x256xf32>
    %10 = tpu.matmul %8, %9, %cst_8 {dimension_numbers = #tpu.dot_dimension_numbers<[1], [0], [0], [1], [0, 0, 1, 1], [], []>} : vector<64x256xbf16>, vector<256x256xbf16>, vector<64x256xf32> -> vector<64x256xf32>
    %c0_9 = arith.constant 0 : index
    %c0_10 = arith.constant 0 : index
    %11 = vector.load %arg5[%c0_9, %c0_10] : memref<1x256xf32, #tpu.memory_space<vmem>>, vector<1x256xf32>
    %12 = vector.broadcast %11 : vector<1x256xf32> to vector<64x256xf32>
    %13 = arith.addf %10, %12 : vector<64x256xf32>
    %cst_11 = arith.constant 0.000000e+00 : f32
    %14 = vector.broadcast %cst_11 : f32 to vector<64x256xf32>
    %15 = arith.maximumf %13, %14 : vector<64x256xf32>
    %16 = arith.truncf %15 : vector<64x256xf32> to vector<64x256xbf16>
    %c0_12 = arith.constant 0 : index
    %c0_13 = arith.constant 0 : index
    %17 = vector.load %arg6[%c0_12, %c0_13] : memref<256x128xbf16, #tpu.memory_space<vmem>>, vector<256x128xbf16>
    %cst_14 = arith.constant dense<0.000000e+00> : vector<64x128xf32>
    %18 = tpu.matmul %16, %17, %cst_14 {dimension_numbers = #tpu.dot_dimension_numbers<[1], [0], [0], [1], [0, 0, 1, 1], [], []>} : vector<64x256xbf16>, vector<256x128xbf16>, vector<64x128xf32> -> vector<64x128xf32>
    %c0_15 = arith.constant 0 : index
    %c0_16 = arith.constant 0 : index
    %19 = vector.load %arg7[%c0_15, %c0_16] : memref<1x128xf32, #tpu.memory_space<vmem>>, vector<1x128xf32>
    %20 = vector.broadcast %19 : vector<1x128xf32> to vector<64x128xf32>
    %21 = arith.addf %18, %20 : vector<64x128xf32>
    %22 = arith.truncf %21 : vector<64x128xf32> to vector<64x128xbf16>
    %c0_17 = arith.constant 0 : index
    %c0_18 = arith.constant 0 : index
    %23 = vector.load %arg8[%c0_17, %c0_18] : memref<64x128xbf16, #tpu.memory_space<vmem>>, vector<64x128xbf16>
    tpu.vector_store %arg8[%c0_17, %c0_18], %22 {strides = array<i32>} : memref<64x128xbf16, #tpu.memory_space<vmem>>, vector<64x128xbf16>,
    return
  }
  func.func @transform_0(%arg0: i32) -> (i32, i32) {
    %c0_i32 = arith.constant 0 : i32
    %c0_i32_0 = arith.constant 0 : i32
    return %arg0, %c0_i32 : i32, i32
  }
  func.func @transform_1(%arg0: i32) -> (i32, i32) {
    %c0_i32 = arith.constant 0 : i32
    %c0_i32_0 = arith.constant 0 : i32
    %c0_i32_1 = arith.constant 0 : i32
    return %c0_i32, %c0_i32_0 : i32, i32
  }
  func.func @transform_2(%arg0: i32) -> (i32, i32) {
    %c0_i32 = arith.constant 0 : i32
    %c0_i32_0 = arith.constant 0 : i32
    %c0_i32_1 = arith.constant 0 : i32
    return %c0_i32, %c0_i32_0 : i32, i32
  }
  func.func @transform_3(%arg0: i32) -> (i32, i32) {
    %c0_i32 = arith.constant 0 : i32
    %c0_i32_0 = arith.constant 0 : i32
    %c0_i32_1 = arith.constant 0 : i32
    return %c0_i32, %c0_i32_0 : i32, i32
  }
  func.func @transform_4(%arg0: i32) -> (i32, i32) {
    %c0_i32 = arith.constant 0 : i32
    %c0_i32_0 = arith.constant 0 : i32
    %c0_i32_1 = arith.constant 0 : i32
    return %c0_i32, %c0_i32_0 : i32, i32
  }
  func.func @transform_5(%arg0: i32) -> (i32, i32) {
    %c0_i32 = arith.constant 0 : i32
    %c0_i32_0 = arith.constant 0 : i32
    %c0_i32_1 = arith.constant 0 : i32
    return %c0_i32, %c0_i32_0 : i32, i32
  }
  func.func @transform_6(%arg0: i32) -> (i32, i32) {
    %c0_i32 = arith.constant 0 : i32
    %c0_i32_0 = arith.constant 0 : i32
    %c0_i32_1 = arith.constant 0 : i32
    return %c0_i32, %c0_i32_0 : i32, i32
  }
  func.func @transform_7(%arg0: i32) -> (i32, i32) {
    %c0_i32 = arith.constant 0 : i32
    %c0_i32_0 = arith.constant 0 : i32
    return %arg0, %c0_i32 : i32, i32
  }
}

</mosaic_0001>

<bundles_post_ra>
// kernel: tpu_custom_call.1
= control target key start
LH: loop header
LB: loop body
LE: loop exit
PB: predicated region body
PF: predicated region fallthrough
CT: control target
= control target key end

     0   :  { %12 = vsyncpa [#allocation3], 0  ;;  %s1210_s0 = inlined_call_operand.vmem [shape: bf16[64,40], index: 0, kind: input, shape index: {}]   ;;  %s1211_s1 = inlined_call_operand.vmem [shape: bf16[40,256], index: 1, kind: input, shape index: {}]   ;;  %s1212_s2 = inlined_call_operand.vmem [shape: f32[1,256], index: 2, kind: input, shape index: {}]   ;;  %s1213_s3 = inlined_call_operand.hbm [shape: bf16[256,256], index: 3, kind: input, shape index: {}]   ;;  %s1214_s4 = inlined_call_operand.vmem [shape: f32[1,256], index: 4, kind: input, shape index: {}]   ;;  %s1215_s5 = inlined_call_operand.hbm [shape: bf16[256,128], index: 5, kind: input, shape index: {}]   ;;  %s1216_s6 = inlined_call_operand.vmem [shape: f32[1,128], index: 6, kind: input, shape index: {}]   ;;  %s1217_s7 = inlined_call_operand.hbm [shape: bf16[64,128], index: 7, kind: output, shape index: {}]  }
   0x1   :  { %13 = vsyncpa [#allocation6], 0 }
   0x2   :  { %14 = vsyncpa [#allocation4], 0  ;;  %s1095_s24 = smov [#allocation2]  }
   0x3   :  { %s26_s25 = sshll.u32 %s1095_s24, 4  ;;  %s27_s25 = int_to_ptr.vmem [resolvable:$true] %s26_s25 }
   0x4   :  { %s1037_s26 = scalar_lea.vmem %s27_s25, 4096  ;;  %p1042_p1 = scmp.lt.s32.totalorder %s27_s25, %s27_s25 }
   0x5   :  { %p1038_p0 = scmp.ne.s32.totalorder %s27_s25, %s1037_s26  ;;  %p1043_p2 = scmp.lt.s32.totalorder %s1037_s26, %s1037_s26 }
   0x7   :  { %p1044_p3 = por %p1043_p2, %p1042_p1 }
   0x9   :  { %p1045_p4 = pnand %p1044_p3, %p1038_p0 }
   0xb   :  { %1048 = shalt.err (!%p1045_p4)
}
   0xc   :  { %s1096_s27 = smov 128   ;;  %s1097_s28 = smov 8  }
   0xd   :  { %32 = dma.hbm_to_vmem [thread:$0]  %s1213_s3, 4096, %s27_s25, [#allocation3], %s1096_s27, %s1096_s27, %s1097_s28  }
   0xe   :  { %s1098_s8 = smov [#allocation5]  }
   0xf   :  { %s40_s9 = sshll.u32 %s1098_s8, 4  ;;  %s41_s9 = int_to_ptr.vmem [resolvable:$true] %s40_s9 }
  0x10   :  { %s1057_s10 = scalar_lea.vmem %s41_s9, 2048  ;;  %p1062_p6 = scmp.lt.s32.totalorder %s41_s9, %s41_s9 }
  0x11   :  { %p1058_p5 = scmp.ne.s32.totalorder %s41_s9, %s1057_s10  ;;  %p1063_p7 = scmp.lt.s32.totalorder %s1057_s10, %s1057_s10 }
  0x13   :  { %p1064_p8 = por %p1063_p7, %p1062_p6 }
  0x15   :  { %p1065_p9 = pnand %p1064_p8, %p1058_p5 }
  0x17   :  { %1068 = shalt.err (!%p1065_p9)
}
  0x18   :  { %s1099_s11 = smov 64   ;;  %s1100_s12 = smov 4  }
  0x19   :  { %46 = dma.hbm_to_vmem [thread:$0]  %s1215_s5, 2048, %s41_s9, [#allocation6], %s1099_s11, %s1099_s11, %s1100_s12  }
  0x1a   :  { %1089 = dma.done.wait [#allocation3], 4096  }
  0x1b   :  { %1090 = vsyncadd [#allocation3], 4294963200 }
  0x1c   :  { %1091 = dma.done.wait [#allocation6], 2048  }
  0x1d   :  { %1092 = vsyncadd [#allocation6], 4294965248  ;;  %v1101_v0 = vmov 0   ;;  %v68_v1 = vld [vmem:[%s1211_s1 + $0x20] sm:$0xff]  ;;  %vm139_vm0 = vcmask 1043456   ;;  %vm126_vm1 = vcmask 326656   ;;  %v71_v55 = vlaneseq }
  0x1e   :  { %178 = vmatprep.mubr.bf16.mxu0 %v1101_v0  ;;  %v811_v2 = vcombine.high %v68_v1, %v68_v1  ;;  %v810_v3 = vcombine.low %v68_v1, %v68_v1  ;;  %v955_v4 = vld [vmem:[%s1211_s1 + $0x14] ss:$8 sps:$4 sm:$0xff]   ;;  %v957_v6 = vld [vmem:[%s1211_s1 + $0x10] ss:$8 sps:$4 sm:$0xff]   ;;  %v958_v7 = vld [vmem:[%s1211_s1 + $0x4] ss:$8 sps:$4 sm:$0xff]  }
  0x1f   :  { %v960_v8 = vld [vmem:[%s1211_s1] ss:$8 sps:$4 sm:$0xff]   ;;  %v965_v9 = vld [vmem:[#allocation2 + $0x74] ss:$8 sps:$4 sm:$0xff]   ;;  %v967_v10 = vld [vmem:[#allocation2 + $0x70] ss:$8 sps:$4 sm:$0xff]  }
  0x20   :  { %812 = vmatprep.subr.msk.bf16.mxu0 %vm139_vm0, %v811_v2  ;;  %v141_v5 = vsel %vm139_vm0, %v810_v3, 0  ;;  %447 = vmatprep.subr.bf16.mxu1 %v965_v9  ;;  %v968_v11 = vld [vmem:[#allocation2 + $0x64] ss:$8 sps:$4 sm:$0xff]   ;;  %v970_v13 = vld [vmem:[#allocation2 + $0x60] ss:$8 sps:$4 sm:$0xff]   ;;  %v963_v23 = vld [vmem:[%s1210_s0 + $0x10] sm:$0xff]  }
  0x21   :  { %157 = vmatpush1.bf16.msra.mxu0 %v141_v5  ;;  %v961_v12 = vld [vmem:[%s1210_s0] sm:$0xff]   ;;  %448 = vmatpush1.bf16.msra.mxu1 %v967_v10  ;;  %v971_v14 = vld [vmem:[#allocation2 + $0x54] ss:$8 sps:$4 sm:$0xff]   ;;  %v973_v15 = vld [vmem:[#allocation2 + $0x50] ss:$8 sps:$4 sm:$0xff]   ;;  %v1183_v56 = vshrl.u32 %v71_v55, 7 }
  0x22   :  { %158 = vmatprep.subr.bf16.mxu0 %v955_v4  ;;  %449 = vmatprep.subr.bf16.mxu1 %v968_v11  ;;  %v974_v16 = vld [vmem:[#allocation2 + $0x44] ss:$8 sps:$4 sm:$0xff]   ;;  %v976_v18 = vld [vmem:[#allocation2 + $0x40] ss:$8 sps:$4 sm:$0xff]   ;;  %v977_v19 = vld [vmem:[#allocation2 + $0x34] ss:$8 sps:$4 sm:$0xff]  }
  0x23   :  { %v962_v17 = vld [vmem:[%s1210_s0 + $0x8] sm:$0xff]   ;;  %v979_v20 = vld [vmem:[#allocation2 + $0x30] ss:$8 sps:$4 sm:$0xff]   ;;  %v983_v24 = vld [vmem:[#allocation2 + $0x14] ss:$8 sps:$4 sm:$0xff]   ;;  %v77_v57 = vsub.s32 1, %v1183_v56 }
  0x24   :  { %v980_v21 = vld [vmem:[#allocation2 + $0x24] ss:$8 sps:$4 sm:$0xff]   ;;  %v982_v22 = vld [vmem:[#allocation2 + $0x20] ss:$8 sps:$4 sm:$0xff]   ;;  %v985_v25 = vld [vmem:[#allocation2 + $0x10] ss:$8 sps:$4 sm:$0xff]  }
  0x25   :  { %159 = vmatpush1.bf16.msra.mxu0 %v957_v6  ;;  %450 = vmatpush1.bf16.msra.mxu1 %v970_v13  ;;  %v986_v26 = vld [vmem:[#allocation2 + $0x4] ss:$8 sps:$4 sm:$0xff]   ;;  %v988_v27 = vld [vmem:[#allocation2] ss:$8 sps:$4 sm:$0xff]   ;;  %v964_v28 = vld [vmem:[%s1210_s0 + $0x18] sm:$0xff]   ;;  %v73_v58 = vsub.s32 0, %v1183_v56 }
  0x26   :  { %160 = vmatprep.subr.bf16.mxu0 %v958_v7  ;;  %451 = vmatprep.subr.bf16.mxu1 %v971_v14  ;;  %v989_v29 = vld [vmem:[#allocation2 + $0xf4] ss:$8 sps:$4 sm:$0xff]   ;;  %v991_v30 = vld [vmem:[#allocation2 + $0xf0] ss:$8 sps:$4 sm:$0xff]   ;;  %v992_v31 = vld [vmem:[#allocation2 + $0xe4] ss:$8 sps:$4 sm:$0xff]  }
  0x27   :  { %v994_v32 = vld [vmem:[#allocation2 + $0xe0] ss:$8 sps:$4 sm:$0xff]   ;;  %v995_v33 = vld [vmem:[#allocation2 + $0xd4] ss:$8 sps:$4 sm:$0xff]   ;;  %v997_v34 = vld [vmem:[#allocation2 + $0xd0] ss:$8 sps:$4 sm:$0xff]  }
  0x28   :  { %v998_v35 = vld [vmem:[#allocation2 + $0xc4] ss:$8 sps:$4 sm:$0xff]   ;;  %v1000_v36 = vld [vmem:[#allocation2 + $0xc0] ss:$8 sps:$4 sm:$0xff]   ;;  %v1001_v37 = vld [vmem:[#allocation2 + $0xb4] ss:$8 sps:$4 sm:$0xff]  }
  0x29   :  { %161 = vmatpush1.bf16.msra.mxu0 %v960_v8  ;;  %452 = vmatpush1.bf16.msra.mxu1 %v973_v15  ;;  %v1003_v38 = vld [vmem:[#allocation2 + $0xb0] ss:$8 sps:$4 sm:$0xff]   ;;  %v1004_v39 = vld [vmem:[#allocation2 + $0xa4] ss:$8 sps:$4 sm:$0xff]   ;;  %v1006_v40 = vld [vmem:[#allocation2 + $0xa0] ss:$8 sps:$4 sm:$0xff]  }
  0x2a   :  { %453 = vmatprep.subr.bf16.mxu1 %v974_v16  ;;  %v1007_v41 = vld [vmem:[#allocation2 + $0x94] ss:$8 sps:$4 sm:$0xff]   ;;  %v1009_v42 = vld [vmem:[#allocation2 + $0x90] ss:$8 sps:$4 sm:$0xff]   ;;  %v1010_v43 = vld [vmem:[#allocation2 + $0x84] ss:$8 sps:$4 sm:$0xff]  }
  0x2b   :  { %v1012_v44 = vld [vmem:[#allocation2 + $0x80] ss:$8 sps:$4 sm:$0xff]   ;;  %v1013_v45 = vld [vmem:[#allocation5 + $0x78] sm:$0xff]   ;;  %v1015_v47 = vld [vmem:[#allocation5 + $0x70] sm:$0xff]  }
  0x2c   :  { %813 = vmatmul.mubr.msk.bf16.vlgmr.msra.gmra.mxu0 %vm126_vm1, %v961_v12  ;;  %v1014_v46 = vld [vmem:[#allocation5 + $0x38] sm:$0xff]   ;;  %905 = vmatprep.subr.bf16.mxu0 %v1013_v45  ;;  %v1016_v48 = vld [vmem:[#allocation5 + $0x30] sm:$0xff]   ;;  %v1017_v49 = vld [vmem:[#allocation5 + $0x68] sm:$0xff]  }
  0x2d   :  { %188 = vmatprep.mubr.bf16.mxu0 %v1101_v0  ;;  %454 = vmatpush1.bf16.msra.mxu1 %v976_v18  ;;  %v1018_v50 = vld [vmem:[#allocation5 + $0x28] sm:$0xff]   ;;  %v1019_v51 = vld [vmem:[#allocation5 + $0x60] sm:$0xff]   ;;  %v1021_v53 = vld [vmem:[#allocation5 + $0x58] sm:$0xff]  }
  0x2e   :  { %455 = vmatprep.subr.bf16.mxu1 %v977_v19  ;;  %906 = vmatpush3.bf16.msra.mxu0 %v1014_v46  ;;  %v1020_v52 = vld [vmem:[#allocation5 + $0x20] sm:$0xff]   ;;  %v1022_v54 = vld [vmem:[#allocation5 + $0x18] sm:$0xff]   ;;  %v1024_v55 = vld [vmem:[#allocation5 + $0x10] sm:$0xff]  }
  0x2f   :  { %907 = vmatprep.subr.bf16.mxu0 %v1015_v47  ;;  %v69_v59 = vld [vmem:[%s1212_s2] sm:$0x3] }
  0x30   :  { %v78_v61 = vrot.slane %v69_v59, %v77_v57  ;;  %v74_v62 = vrot.slane %v69_v59, %v73_v58  ;;  %v1025_v59 = vld [vmem:[#allocation5 + $0x48] sm:$0xff]  }
  0x31   :  { %456 = vmatpush1.bf16.msra.mxu1 %v979_v20 }
  0x32   :  { %457 = vmatprep.subr.bf16.mxu1 %v980_v21  ;;  %908 = vmatpush3.bf16.msra.mxu0 %v1016_v48 }
  0x33   :  { %909 = vmatprep.subr.bf16.mxu0 %v1017_v49 }
  0x34   :  { %814 = vmatmul.mubr.msk.bf16.gmra.mxu0 %vm126_vm1, %v962_v17 }
  0x35   :  { %198 = vmatprep.mubr.bf16.mxu0 %v1101_v0  ;;  %458 = vmatpush1.bf16.msra.mxu1 %v982_v22 }
  0x36   :  { %459 = vmatprep.subr.bf16.mxu1 %v983_v24  ;;  %910 = vmatpush3.bf16.msra.mxu0 %v1018_v50 }
  0x37   :  { %911 = vmatprep.subr.bf16.mxu0 %v1019_v51 }
  0x39   :  { %460 = vmatpush1.bf16.msra.mxu1 %v985_v25 }
  0x3a   :  { %461 = vmatprep.subr.bf16.mxu1 %v986_v26  ;;  %912 = vmatpush3.bf16.msra.mxu0 %v1020_v52 }
  0x3b   :  { %913 = vmatprep.subr.bf16.mxu0 %v1021_v53 }
  0x3c   :  { %815 = vmatmul.mubr.msk.bf16.gmra.mxu0 %vm126_vm1, %v963_v23 }
  0x3d   :  { %208 = vmatprep.mubr.bf16.mxu0 %v1101_v0  ;;  %462 = vmatpush1.bf16.msra.mxu1 %v988_v27 }
  0x3e   :  { %463 = vmatprep.subr.bf16.mxu1 %v989_v29  ;;  %914 = vmatpush3.bf16.msra.mxu0 %v1022_v54  ;;  %v1023_v54 = vld [vmem:[#allocation5 + $0x50] sm:$0xff]  }
  0x3f   :  { %915 = vmatprep.subr.bf16.mxu0 %v1023_v54 }
  0x41   :  { %464 = vmatpush2.bf16.msra.mxu1 %v991_v30 }
  0x42   :  { %465 = vmatprep.subr.bf16.mxu1 %v992_v31  ;;  %916 = vmatpush3.bf16.msra.mxu0 %v1024_v55 }
  0x43   :  { %917 = vmatprep.subr.bf16.mxu0 %v1025_v59 }
  0x44   :  { %816 = vmatmul.mubr.msk.bf16.gmra.mxu0 %vm126_vm1, %v964_v28 }
  0x45   :  { %466 = vmatpush2.bf16.msra.mxu1 %v994_v32 }
  0x46   :  { %467 = vmatprep.subr.bf16.mxu1 %v995_v33 }
  0x49   :  { %468 = vmatpush2.bf16.msra.mxu1 %v997_v34 }
  0x4a   :  { %469 = vmatprep.subr.bf16.mxu1 %v998_v35 }
  0x4d   :  { %470 = vmatpush2.bf16.msra.mxu1 %v1000_v36 }
  0x4e   :  { %471 = vmatprep.subr.bf16.mxu1 %v1001_v37 }
  0x51   :  { %472 = vmatpush2.bf16.msra.mxu1 %v1003_v38 }
  0x52   :  { %473 = vmatprep.subr.bf16.mxu1 %v1004_v39 }
  0x55   :  { %474 = vmatpush2.bf16.msra.mxu1 %v1006_v40 }
  0x56   :  { %475 = vmatprep.subr.bf16.mxu1 %v1007_v41 }
  0x59   :  { %476 = vmatpush2.bf16.msra.mxu1 %v1009_v42 }
  0x5a   :  { %477 = vmatprep.subr.bf16.mxu1 %v1010_v43 }
  0x5d   :  { %478 = vmatpush2.bf16.msra.mxu1 %v1012_v44 }
  0xec   :  { %v180_v60 = vpop.f32.mrf.mxu0 }
  0xed   :  { %v181_v3 = vadd.f32 %v180_v60, %v74_v62  ;;  %v1026_v60 = vld [vmem:[#allocation5 + $0x8] sm:$0xff]  }
  0xee   :  { %v182_v63 = vpop.f32.mrf.mxu0  ;;  %918 = vmatpush3.bf16.msra.mxu0 %v1026_v60 }
  0xef   :  { %v183_v1 = vadd.f32 %v182_v63, %v78_v61  ;;  %v219_v10 = vmax.f32 %v181_v3, 0.0  ;;  %v1028_v63 = vld [vmem:[#allocation5] sm:$0xff]  }
  0xf0   :  { %v184_v0 = vpop.f32.mrf.mxu0 }
  0xf1   :  { %v185_v2 = vadd.f32 %v184_v0, %v74_v62  ;;  %v220_v8 = vmax.f32 %v183_v1, 0.0 }
  0xf2   :  { %v186_v4 = vpop.f32.mrf.mxu0 }
  0xf3   :  { %v187_v5 = vadd.f32 %v186_v4, %v78_v61  ;;  %v221_v6 = vmax.f32 %v185_v2, 0.0 }
  0xf4   :  { %v190_v7 = vpop.f32.mrf.mxu0 }
  0xf5   :  { %v222_v9 = vmax.f32 %v187_v5, 0.0  ;;  %v235_v13 = vpack.c.bf16 %v221_v6, %v219_v10  ;;  %v191_v17 = vadd.f32 %v190_v7, %v74_v62 }
  0xf6   :  { %v192_v11 = vpop.f32.mrf.mxu0 }
  0xf7   :  { %v236_v12 = vpack.c.bf16 %v222_v9, %v220_v8  ;;  %v193_v15 = vadd.f32 %v192_v11, %v78_v61  ;;  %v223_v24 = vmax.f32 %v191_v17, 0.0 }
  0xf8   :  { %v194_v14 = vpop.f32.mrf.mxu0 }
  0xf9   :  { %v195_v16 = vadd.f32 %v194_v14, %v74_v62  ;;  %479 = vmatprep.mubr.bf16.mxu1 %v236_v12  ;;  %v224_v22 = vmax.f32 %v193_v15, 0.0 }
  0xfa   :  { %v196_v18 = vpop.f32.mrf.mxu0  ;;  %480 = vmatmul.mubr.bf16.vlgmr.msra.gmra.mxu1 %v235_v13 }
  0xfb   :  { %v197_v19 = vadd.f32 %v196_v18, %v78_v61  ;;  %v225_v20 = vmax.f32 %v195_v16, 0.0 }
  0xfc   :  { %v200_v21 = vpop.f32.mrf.mxu0 }
  0xfd   :  { %v226_v23 = vmax.f32 %v197_v19, 0.0  ;;  %v237_v27 = vpack.c.bf16 %v225_v20, %v223_v24  ;;  %v201_v31 = vadd.f32 %v200_v21, %v74_v62 }
  0xfe   :  { %v202_v25 = vpop.f32.mrf.mxu0 }
  0xff   :  { %v238_v26 = vpack.c.bf16 %v226_v23, %v224_v22  ;;  %v203_v29 = vadd.f32 %v202_v25, %v78_v61  ;;  %v227_v38 = vmax.f32 %v201_v31, 0.0 }
 0x100   :  { %v204_v28 = vpop.f32.mrf.mxu0 }
 0x101   :  { %v205_v30 = vadd.f32 %v204_v28, %v74_v62  ;;  %489 = vmatprep.mubr.bf16.mxu1 %v238_v26  ;;  %v228_v36 = vmax.f32 %v203_v29, 0.0 }
 0x102   :  { %v206_v32 = vpop.f32.mrf.mxu0  ;;  %490 = vmatmul.mubr.bf16.gmra.mxu1 %v237_v27 }
 0x103   :  { %v207_v33 = vadd.f32 %v206_v32, %v78_v61  ;;  %v229_v34 = vmax.f32 %v205_v30, 0.0 }
 0x104   :  { %v210_v35 = vpop.f32.mrf.mxu0 }
 0x105   :  { %v230_v37 = vmax.f32 %v207_v33, 0.0  ;;  %v239_v41 = vpack.c.bf16 %v229_v34, %v227_v38  ;;  %v211_v45 = vadd.f32 %v210_v35, %v74_v62 }
 0x106   :  { %v212_v39 = vpop.f32.mrf.mxu0 }
 0x107   :  { %v240_v40 = vpack.c.bf16 %v230_v37, %v228_v36  ;;  %v213_v43 = vadd.f32 %v212_v39, %v78_v61  ;;  %v231_v51 = vmax.f32 %v211_v45, 0.0 }
 0x108   :  { %v214_v42 = vpop.f32.mrf.mxu0 }
 0x109   :  { %v215_v44 = vadd.f32 %v214_v42, %v74_v62  ;;  %499 = vmatprep.mubr.bf16.mxu1 %v240_v40  ;;  %v232_v49 = vmax.f32 %v213_v43, 0.0  ;;  %v1027_v62 = vld [vmem:[#allocation5 + $0x40] sm:$0xff]  }
 0x10a   :  { %v216_v46 = vpop.f32.mrf.mxu0  ;;  %500 = vmatmul.mubr.bf16.gmra.mxu1 %v239_v41  ;;  %919 = vmatprep.subr.bf16.mxu0 %v1027_v62 }
 0x10b   :  { %v217_v47 = vadd.f32 %v216_v46, %v78_v61  ;;  %v233_v48 = vmax.f32 %v215_v44, 0.0  ;;  %920 = vmatpush3.bf16.msra.mxu0 %v1028_v63  ;;  %v275_v61 = vld [vmem:[%s1214_s4] sm:$0x3] }
 0x10c   :  { %v284_v1 = vrot.slane %v275_v61, %v77_v57  ;;  %v280_v2 = vrot.slane %v275_v61, %v73_v58  ;;  %v849_v63 = vld [vmem:[%s1216_s6] ss:$0 sm:$0xff]  ;;  %s1102_s6 = smov [#allocation7]  }
 0x10d   :  { %v234_v50 = vmax.f32 %v217_v47, 0.0  ;;  %v241_v53 = vpack.c.bf16 %v233_v48, %v231_v51  ;;  %s789_s10 = sshll.u32 %s1102_s6, 4  ;;  %s790_s10 = int_to_ptr.vmem [resolvable:$true] %s789_s10 }
 0x10e   :  { %s1069_s13 = scalar_lea.vmem %s790_s10, 512  ;;  %p1074_p11 = scmp.lt.s32.totalorder %s790_s10, %s790_s10 }
 0x10f   :  { %v242_v52 = vpack.c.bf16 %v234_v50, %v232_v49  ;;  %p1070_p10 = scmp.ne.s32.totalorder %s790_s10, %s1069_s13  ;;  %p1075_p12 = scmp.lt.s32.totalorder %s1069_s13, %s1069_s13 }
 0x111   :  { %509 = vmatprep.mubr.bf16.mxu1 %v242_v52  ;;  %p1076_p13 = por %p1075_p12, %p1074_p11 }
 0x112   :  { %510 = vmatmul.mubr.bf16.gmra.mxu1 %v241_v53 }
 0x113   :  { %p1077_p0 = pnand %p1076_p13, %p1070_p10 }
 0x1ba   :  { %v481_v0 = vpop.f32.mrf.mxu1 }
 0x1bb   :  { %v482_v7 = vadd.f32 %v481_v0, %v280_v2 }
 0x1bc   :  { %v483_v3 = vpop.f32.mrf.mxu1 }
 0x1bd   :  { %v484_v5 = vadd.f32 %v483_v3, %v284_v1  ;;  %v520_v14 = vmax.f32 %v482_v7, 0.0 }
 0x1be   :  { %v485_v4 = vpop.f32.mrf.mxu1 }
 0x1bf   :  { %v486_v6 = vadd.f32 %v485_v4, %v280_v2  ;;  %v521_v12 = vmax.f32 %v484_v5, 0.0 }
 0x1c0   :  { %v487_v8 = vpop.f32.mrf.mxu1 }
 0x1c1   :  { %v488_v9 = vadd.f32 %v487_v8, %v284_v1  ;;  %v522_v10 = vmax.f32 %v486_v6, 0.0 }
 0x1c2   :  { %v491_v11 = vpop.f32.mrf.mxu1 }
 0x1c3   :  { %v523_v13 = vmax.f32 %v488_v9, 0.0  ;;  %v536_v17 = vpack.c.bf16 %v522_v10, %v520_v14  ;;  %v492_v56 = vadd.f32 %v491_v11, %v280_v2 }
 0x1c4   :  { %v493_v15 = vpop.f32.mrf.mxu1 }
 0x1c5   :  { %v537_v16 = vpack.c.bf16 %v523_v13, %v521_v12  ;;  %v494_v57 = vadd.f32 %v493_v15, %v284_v1  ;;  %v524_v25 = vmax.f32 %v492_v56, 0.0 }
 0x1c6   :  { %v495_v18 = vpop.f32.mrf.mxu1 }
 0x1c7   :  { %v496_v19 = vadd.f32 %v495_v18, %v280_v2  ;;  %711 = vmatprep.mubr.bf16.mxu0 %v537_v16  ;;  %v525_v23 = vmax.f32 %v494_v57, 0.0 }
 0x1c8   :  { %v497_v58 = vpop.f32.mrf.mxu1  ;;  %712 = vmatmul.mubr.bf16.vlgmr.msra.gmra.mxu0 %v536_v17 }
 0x1c9   :  { %v498_v20 = vadd.f32 %v497_v58, %v284_v1  ;;  %v526_v21 = vmax.f32 %v496_v19, 0.0 }
 0x1ca   :  { %v501_v22 = vpop.f32.mrf.mxu1 }
 0x1cb   :  { %v527_v24 = vmax.f32 %v498_v20, 0.0  ;;  %v538_v28 = vpack.c.bf16 %v526_v21, %v524_v25  ;;  %v502_v32 = vadd.f32 %v501_v22, %v280_v2 }
 0x1cc   :  { %v503_v26 = vpop.f32.mrf.mxu1 }
 0x1cd   :  { %v539_v27 = vpack.c.bf16 %v527_v24, %v525_v23  ;;  %v504_v30 = vadd.f32 %v503_v26, %v284_v1  ;;  %v528_v39 = vmax.f32 %v502_v32, 0.0 }
 0x1ce   :  { %v505_v29 = vpop.f32.mrf.mxu1 }
 0x1cf   :  { %v506_v31 = vadd.f32 %v505_v29, %v280_v2  ;;  %719 = vmatprep.mubr.bf16.mxu0 %v539_v27  ;;  %v529_v37 = vmax.f32 %v504_v30, 0.0 }
 0x1d0   :  { %v507_v33 = vpop.f32.mrf.mxu1  ;;  %720 = vmatmul.mubr.bf16.gmra.mxu0 %v538_v28 }
 0x1d1   :  { %v508_v34 = vadd.f32 %v507_v33, %v284_v1  ;;  %v530_v35 = vmax.f32 %v506_v31, 0.0 }
 0x1d2   :  { %v511_v36 = vpop.f32.mrf.mxu1 }
 0x1d3   :  { %v531_v38 = vmax.f32 %v508_v34, 0.0  ;;  %v540_v42 = vpack.c.bf16 %v530_v35, %v528_v39  ;;  %v512_v46 = vadd.f32 %v511_v36, %v280_v2 }
 0x1d4   :  { %v513_v40 = vpop.f32.mrf.mxu1 }
 0x1d5   :  { %v541_v41 = vpack.c.bf16 %v531_v38, %v529_v37  ;;  %v514_v44 = vadd.f32 %v513_v40, %v284_v1  ;;  %v532_v52 = vmax.f32 %v512_v46, 0.0 }
 0x1d6   :  { %v515_v43 = vpop.f32.mrf.mxu1 }
 0x1d7   :  { %v516_v45 = vadd.f32 %v515_v43, %v280_v2  ;;  %727 = vmatprep.mubr.bf16.mxu0 %v541_v41  ;;  %v533_v50 = vmax.f32 %v514_v44, 0.0 }
 0x1d8   :  { %v517_v47 = vpop.f32.mrf.mxu1  ;;  %728 = vmatmul.mubr.bf16.gmra.mxu0 %v540_v42 }
 0x1d9   :  { %v518_v48 = vadd.f32 %v517_v47, %v284_v1  ;;  %v534_v49 = vmax.f32 %v516_v45, 0.0 }
 0x1db   :  { %v535_v51 = vmax.f32 %v518_v48, 0.0  ;;  %v542_v54 = vpack.c.bf16 %v534_v49, %v532_v52 }
 0x1dd   :  { %v543_v53 = vpack.c.bf16 %v535_v51, %v533_v50 }
 0x1df   :  { %735 = vmatprep.mubr.bf16.mxu0 %v543_v53 }
 0x1e0   :  { %736 = vmatmul.mubr.bf16.gmra.mxu0 %v542_v54 }
 0x288   :  { %v921_v55 = vpop.f32.mrf.mxu0 }
 0x28a   :  { %v922_v59 = vpop.f32.mrf.mxu0 }
 0x28b   :  { %v923_v62 = vadd.f32 %v922_v59, %v921_v55 }
 0x28c   :  { %v924_v60 = vpop.f32.mrf.mxu0 }
 0x28d   :  { %v714_v1 = vadd.f32 %v923_v62, %v849_v63 }
 0x28e   :  { %v925_v61 = vpop.f32.mrf.mxu0 }
 0x28f   :  { %v926_v0 = vadd.f32 %v925_v61, %v924_v60 }
 0x290   :  { %v927_v2 = vpop.f32.mrf.mxu0 }
 0x291   :  { %v717_v3 = vadd.f32 %v926_v0, %v849_v63 }
 0x292   :  { %v928_v4 = vpop.f32.mrf.mxu0 }
 0x293   :  { %v885_v5 = vpack.c.bf16 %v717_v3, %v714_v1  ;;  %v929_v7 = vadd.f32 %v928_v4, %v927_v2 }
 0x294   :  { %v930_v6 = vpop.f32.mrf.mxu0 }
 0x295   :  { %886 = vst [vmem:[#allocation7] sm:$0xff] %v885_v5   ;;  %v722_v11 = vadd.f32 %v929_v7, %v849_v63 }
 0x296   :  { %v931_v8 = vpop.f32.mrf.mxu0 }
 0x297   :  { %v932_v9 = vadd.f32 %v931_v8, %v930_v6 }
 0x298   :  { %v933_v10 = vpop.f32.mrf.mxu0 }
 0x299   :  { %v725_v12 = vadd.f32 %v932_v9, %v849_v63 }
 0x29a   :  { %v934_v13 = vpop.f32.mrf.mxu0 }
 0x29b   :  { %v890_v14 = vpack.c.bf16 %v725_v12, %v722_v11  ;;  %v935_v16 = vadd.f32 %v934_v13, %v933_v10 }
 0x29c   :  { %v936_v15 = vpop.f32.mrf.mxu0 }
 0x29d   :  { %902 = vst [vmem:[#allocation7 + $0x8] sm:$0xff] %v890_v14   ;;  %v730_v19 = vadd.f32 %v935_v16, %v849_v63 }
 0x29e   :  { %v937_v17 = vpop.f32.mrf.mxu0 }
 0x29f   :  { %v938_v18 = vadd.f32 %v937_v17, %v936_v15 }
 0x2a0   :  { %v939_v57 = vpop.f32.mrf.mxu0 }
 0x2a1   :  { %v733_v56 = vadd.f32 %v938_v18, %v849_v63 }
 0x2a2   :  { %v940_v58 = vpop.f32.mrf.mxu0 }
 0x2a3   :  { %v895_v20 = vpack.c.bf16 %v733_v56, %v730_v19  ;;  %v941_v22 = vadd.f32 %v940_v58, %v939_v57 }
 0x2a4   :  { %v942_v21 = vpop.f32.mrf.mxu0 }
 0x2a5   :  { %903 = vst [vmem:[#allocation7 + $0x10] sm:$0xff] %v895_v20   ;;  %v738_v25 = vadd.f32 %v941_v22, %v849_v63 }
 0x2a6   :  { %v943_v23 = vpop.f32.mrf.mxu0 }
 0x2a7   :  { %v944_v24 = vadd.f32 %v943_v23, %v942_v21 }
 0x2a9   :  { %v741_v26 = vadd.f32 %v944_v24, %v849_v63 }
 0x2ab   :  { %v900_v27 = vpack.c.bf16 %v741_v26, %v738_v25 }
 0x2ad   :  { %904 = vst [vmem:[#allocation7 + $0x18] sm:$0xff] %v900_v27  }
 0x2ae   :  { %1080 = shalt.err (!%p1077_p0)
}
 0x2af   :  { %795 = dma.vmem_to_hbm [thread:$0]  %s790_s10, 512, %s1217_s7, [#allocation4], %s1099_s11, %s1099_s11, %s1100_s12  }
 0x2b0   :  { %1093 = dma.done.wait [#allocation4], 512  }
 0x2b1   :  { %1094 = vsyncadd [#allocation4], 4294966784 }
 0x2b2   :  { %799 = vsyncpa [#allocation3], 1 }
 0x2b3   :  { %800 = vsyncpa [#allocation6], 1 }
 0x2b4   :  { %801 = vsyncpa [#allocation4], 1 }

</bundles_post_ra>
